<compile_context>
chip_gen: v6e
topology: v6e:2x2x1
jax: 0.10.0
libtpu: 0.0.40
codegen_flags: <defaults>
</compile_context>

<pallas_src>
import functools

import numpy as np
import jax
import jax.numpy as jnp
from jax.experimental import pallas as pl
from jax.experimental.pallas import tpu as pltpu


# ---------------------------------------------------------------------------
# Kernel 1: fused attention branch (+ channel scaling of x)
# ---------------------------------------------------------------------------
def _attention_kernel(temperature,
                      x_ref, fcw_ref, bn_scale_ref, bn_shift_ref,
                      chw_ref, chb_ref, fiw_ref, fib_ref,
                      spw_ref, spb_ref, kew_ref, keb_ref,
                      xs_ref, fa_ref, sa_ref, ka_ref):
    # x_ref: (B, H*W, C_in) f32 in VMEM (NHWC with spatial flattened)
    x = x_ref[...]
    bsz = x.shape[0]
    inv_hw = 1.0 / x.shape[1]
    inv_t = 1.0 / temperature

    # AdaptiveAvgPool2d(1)  -> (B, C_in)
    pooled = jnp.sum(x, axis=1) * inv_hw

    # fc (1x1 conv, no bias) + BatchNorm (inference, folded scale/shift) + ReLU
    hidden = jnp.dot(pooled, fcw_ref[...], preferred_element_type=jnp.float32)
    hidden = hidden * bn_scale_ref[...] + bn_shift_ref[...]
    hidden = jnp.maximum(hidden, 0.0)

    def _sigmoid(z):
        return 1.0 / (1.0 + jnp.exp(-z))

    # channel / filter / spatial attentions (sigmoid gates)
    ch = _sigmoid((jnp.dot(hidden, chw_ref[...], preferred_element_type=jnp.float32)
                   + chb_ref[...]) * inv_t)                       # (B, C_in)
    fa = _sigmoid((jnp.dot(hidden, fiw_ref[...], preferred_element_type=jnp.float32)
                   + fib_ref[...]) * inv_t)                       # (B, C_out)
    sa = _sigmoid((jnp.dot(hidden, spw_ref[...], preferred_element_type=jnp.float32)
                   + spb_ref[...]) * inv_t)                       # (B, k*k)

    # kernel attention: softmax over kernel_num
    kl = (jnp.dot(hidden, kew_ref[...], preferred_element_type=jnp.float32)
          + keb_ref[...]) * inv_t                                 # (B, kernel_num)
    kl = kl - jnp.max(kl, axis=-1, keepdims=True)
    ke = jnp.exp(kl)
    ka = ke / jnp.sum(ke, axis=-1, keepdims=True)

    fa_ref[...] = fa
    sa_ref[...] = sa
    ka_ref[...] = ka

    # x = x * channel_attention  (one large lane-dense store per batch)
    for b in range(bsz):
        xs_ref[b] = x[b] * ch[b:b + 1, :]


# ---------------------------------------------------------------------------
# Kernel 2: per-batch dynamic-weight aggregation + im2col matmul + filter gate
# ---------------------------------------------------------------------------
def _dynamic_conv_kernel(patches_ref, w_ref, sa_ref, ka_ref, fa_ref, out_ref):
    # patches_ref: (1, M, K)       im2col patches of channel-scaled x, this batch
    # w_ref      : (kn, K, C_out)  candidate weights, K = k*k*C_in (kh,kw,ci order)
    # sa_ref     : (1, 1, K, 1)    spatial attention expanded along K
    # ka_ref     : (1, kn, 1, 1)   kernel attention (softmax over kn)
    # fa_ref     : (1, 1, C_out)   filter attention
    # out_ref    : (1, M, C_out)
    w = w_ref[...]                                    # (kn, K, C_out)
    mod = w * sa_ref[0]                               # * (1, K, 1)
    agg = jnp.sum(mod * ka_ref[0], axis=0)            # (K, C_out) aggregated weight

    acc = jnp.dot(patches_ref[0], agg,
                  preferred_element_type=jnp.float32)  # (M, C_out) on the MXU
    out_ref[0] = (acc * fa_ref[0]).astype(out_ref.dtype)


# ---------------------------------------------------------------------------
# Wrapper
# ---------------------------------------------------------------------------
def odconv2d_forward(x, params, *, stride=1, padding=0, dilation=1, groups=1,
                     temperature=1.0, bn_eps=1e-5):
    """ODConv2d forward (NCHW in / NCHW out)."""
    assert groups == 1  # TODO(synk): grouped / depthwise (in==out==groups) path
    B, C_in, H, W = x.shape
    weight = params["weight"]                          # (kn, C_out, C_in, k, k)
    kn, C_out, _, k, _ = weight.shape
    assert k > 1 and kn > 1  # TODO(synk): skip paths for kernel_size==1 / kernel_num==1
    A = params["fc_w"].shape[0]
    kk = k * k
    HW = H * W
    f32 = jnp.float32

    x = x.astype(f32)
    x_nhwc = jnp.transpose(x, (0, 2, 3, 1)).reshape(B, HW, C_in)

    # Fold BatchNorm (inference / running stats) into a scale + shift.
    bn_scale = params["bn_gamma"] / jnp.sqrt(params["bn_var"] + bn_eps)     # (A,)
    bn_shift = params["bn_beta"] - params["bn_mean"] * bn_scale             # (A,)

    attn_inputs = [
        x_nhwc,
        params["fc_w"].T.astype(f32),                                       # (C_in, A)
        bn_scale.reshape(1, A).astype(f32),
        bn_shift.reshape(1, A).astype(f32),
        params["channel_fc_w"].T.astype(f32), params["channel_fc_b"].reshape(1, C_in).astype(f32),
        params["filter_fc_w"].T.astype(f32),  params["filter_fc_b"].reshape(1, C_out).astype(f32),
        params["spatial_fc_w"].T.astype(f32), params["spatial_fc_b"].reshape(1, kk).astype(f32),
        params["kernel_fc_w"].T.astype(f32),  params["kernel_fc_b"].reshape(1, kn).astype(f32),
    ]
    vmem = pl.BlockSpec(memory_space=pltpu.MemorySpace.VMEM)

    x_scaled, filter_att, spatial_att, kernel_att = pl.pallas_call(
        functools.partial(_attention_kernel, temperature),
        out_shape=(
            jax.ShapeDtypeStruct((B, HW, C_in), f32),   # channel-scaled x
            jax.ShapeDtypeStruct((B, C_out), f32),      # filter attention
            jax.ShapeDtypeStruct((B, kk), f32),         # spatial attention
            jax.ShapeDtypeStruct((B, kn), f32),         # kernel attention
        ),
        in_specs=[vmem] * len(attn_inputs),
        out_specs=(vmem, vmem, vmem, vmem),
    )(*attn_inputs)

    # ---- im2col (stride / dilation / padding handled here; pure data movement) ----
    H_out = (H + 2 * padding - dilation * (k - 1) - 1) // stride + 1
    W_out = (W + 2 * padding - dilation * (k - 1) - 1) // stride + 1
    M = H_out * W_out
    K = kk * C_in

    xs = x_scaled.reshape(B, H, W, C_in)
    xp = jnp.pad(xs, ((0, 0), (padding, padding), (padding, padding), (0, 0)))
    cols = []
    for kh in range(k):
        for kw in range(k):
            h0, w0 = kh * dilation, kw * dilation
            cols.append(xp[:, h0:h0 + (H_out - 1) * stride + 1:stride,
                           w0:w0 + (W_out - 1) * stride + 1:stride, :])
    patches = jnp.stack(cols, axis=3).reshape(B, M, K)      # K order: (kh, kw, ci)

    # Candidate weights reorganized to (kn, K, C_out) with the same K order.
    w_r = jnp.transpose(weight.astype(f32), (0, 3, 4, 2, 1)).reshape(kn, K, C_out)

    sa_exp = jnp.repeat(spatial_att, C_in, axis=-1).reshape(B, 1, K, 1)
    ka_r = kernel_att.reshape(B, kn, 1, 1)
    fa_r = filter_att.reshape(B, 1, C_out)

    out_flat = pl.pallas_call(
        _dynamic_conv_kernel,
        out_shape=jax.ShapeDtypeStruct((B, M, C_out), f32),
        grid_spec=pltpu.PrefetchScalarGridSpec(
            num_scalar_prefetch=0,
            grid=(B,),
            in_specs=[
                pl.BlockSpec((1, M, K), lambda b: (b, 0, 0)),          # patches
                pl.BlockSpec((kn, K, C_out), lambda b: (0, 0, 0)),     # weights (resident)
                pl.BlockSpec((1, 1, K, 1), lambda b: (b, 0, 0, 0)),    # spatial att
                pl.BlockSpec((1, kn, 1, 1), lambda b: (b, 0, 0, 0)),   # kernel att
                pl.BlockSpec((1, 1, C_out), lambda b: (b, 0, 0)),      # filter att
            ],
            out_specs=pl.BlockSpec((1, M, C_out), lambda b: (b, 0, 0)),
        ),
        compiler_params=pltpu.CompilerParams(
            dimension_semantics=("parallel",)),
    )(patches, w_r, sa_exp, ka_r, fa_r)

    out = out_flat.reshape(B, H_out, W_out, C_out)
    return jnp.transpose(out, (0, 3, 1, 2))                 # NCHW


# ---------------------------------------------------------------------------
# Pure-JAX reference (mirrors the PyTorch forward, BN in inference mode)
# ---------------------------------------------------------------------------
def odconv2d_ref(x, params, *, stride=1, padding=0, dilation=1, groups=1,
                 temperature=1.0, bn_eps=1e-5):
    assert groups == 1
    B, C_in, H, W = x.shape
    weight = params["weight"]
    kn, C_out, _, k, _ = weight.shape
    hi = jax.lax.Precision.HIGHEST

    pooled = jnp.mean(x, axis=(2, 3))                                        # (B, C_in)
    h = jnp.dot(pooled, params["fc_w"].T, precision=hi)                      # (B, A)
    h = ((h - params["bn_mean"]) / jnp.sqrt(params["bn_var"] + bn_eps)
         * params["bn_gamma"] + params["bn_beta"])
    h = jnp.maximum(h, 0.0)

    def head(wn, bn):
        return jnp.dot(h, params[wn].T, precision=hi) + params[bn]

    ch = jax.nn.sigmoid(head("channel_fc_w", "channel_fc_b") / temperature)  # (B, C_in)
    fa = jax.nn.sigmoid(head("filter_fc_w", "filter_fc_b") / temperature)    # (B, C_out)
    sa = jax.nn.sigmoid(head("spatial_fc_w", "spatial_fc_b") / temperature)  # (B, k*k)
    ka = jax.nn.softmax(head("kernel_fc_w", "kernel_fc_b") / temperature, axis=1)

    x_s = x * ch[:, :, None, None]
    agg = (sa.reshape(B, 1, 1, 1, k, k) * ka.reshape(B, kn, 1, 1, 1, 1)
           * weight[None]).sum(axis=1)                                       # (B, C_out, C_in, k, k)

    xg = x_s.reshape(1, B * C_in, H, W)
    wg = agg.reshape(B * C_out, C_in, k, k)
    out = jax.lax.conv_general_dilated(
        xg, wg, window_strides=(stride, stride),
        padding=[(padding, padding), (padding, padding)],
        rhs_dilation=(dilation, dilation),
        dimension_numbers=("NCHW", "OIHW", "NCHW"),
        feature_group_count=B * groups,
        precision=hi)
    out = out.reshape(B, C_out, out.shape[-2], out.shape[-1])
    return out * fa[:, :, None, None]


if __name__ == "__main__":
    # ODConv2d(in_planes=16, out_planes=32, kernel_size=3, stride=1, padding=1,
    #          groups=1, reduction=0.0625, kernel_num=4) on a (2, 16, 16, 16) input.
    B, C_in, C_out, H, W = 2, 16, 32, 16, 16
    k, kn = 3, 4
    stride, padding, dilation, groups = 1, 1, 1, 1
    reduction, min_channel = 0.0625, 16
    A = max(int(C_in * reduction), min_channel)
    temperature = 1.0

    key = jax.random.PRNGKey(0)
    ks = jax.random.split(key, 16)

    def kaiming(kk_, shape, fan_out):
        return (jax.random.normal(kk_, shape, jnp.float32)
                * np.sqrt(2.0 / fan_out)).astype(jnp.float32)

    params = {
        "weight": kaiming(ks[1], (kn, C_out, C_in, k, k), C_out * k * k),
        "fc_w": kaiming(ks[2], (A, C_in), A),
        "bn_gamma": 1.0 + 0.1 * jax.random.normal(ks[3], (A,), jnp.float32),
        "bn_beta": 0.1 * jax.random.normal(ks[4], (A,), jnp.float32),
        "bn_mean": 0.1 * jax.random.normal(ks[5], (A,), jnp.float32),
        "bn_var": jax.random.uniform(ks[6], (A,), jnp.float32, 0.5, 1.5),
        "channel_fc_w": kaiming(ks[7], (C_in, A), C_in),
        "channel_fc_b": 0.1 * jax.random.normal(ks[8], (C_in,), jnp.float32),
        "filter_fc_w": kaiming(ks[9], (C_out, A), C_out),
        "filter_fc_b": 0.1 * jax.random.normal(ks[10], (C_out,), jnp.float32),
        "spatial_fc_w": kaiming(ks[11], (k * k, A), k * k),
        "spatial_fc_b": 0.1 * jax.random.normal(ks[12], (k * k,), jnp.float32),
        "kernel_fc_w": kaiming(ks[13], (kn, A), kn),
        "kernel_fc_b": 0.1 * jax.random.normal(ks[14], (kn,), jnp.float32),
    }
    x = jax.random.normal(ks[0], (B, C_in, H, W), jnp.float32)

    out = odconv2d_forward(x, params, stride=stride, padding=padding,
                           dilation=dilation, groups=groups,
                           temperature=temperature)
    out = jax.block_until_ready(out)

    ref = odconv2d_ref(x, params, stride=stride, padding=padding,
                       dilation=dilation, groups=groups,
                       temperature=temperature)
    np.testing.assert_allclose(np.asarray(out), np.asarray(ref),
                               rtol=1e-3, atol=1e-3)
    print("KERNEL_OK")
</pallas_src>

<mosaic_0001>
module attributes {stable_mosaic.version = 11 : i64} {
  func.func @_attention_kernel(%arg0: memref<2x256x16xf32, #tpu.memory_space<vmem>>, %arg1: memref<16x16xf32, #tpu.memory_space<vmem>>, %arg2: memref<1x16xf32, #tpu.memory_space<vmem>>, %arg3: memref<1x16xf32, #tpu.memory_space<vmem>>, %arg4: memref<16x16xf32, #tpu.memory_space<vmem>>, %arg5: memref<1x16xf32, #tpu.memory_space<vmem>>, %arg6: memref<16x32xf32, #tpu.memory_space<vmem>>, %arg7: memref<1x32xf32, #tpu.memory_space<vmem>>, %arg8: memref<16x9xf32, #tpu.memory_space<vmem>>, %arg9: memref<1x9xf32, #tpu.memory_space<vmem>>, %arg10: memref<16x4xf32, #tpu.memory_space<vmem>>, %arg11: memref<1x4xf32, #tpu.memory_space<vmem>>, %arg12: memref<2x256x16xf32, #tpu.memory_space<vmem>>, %arg13: memref<2x32xf32, #tpu.memory_space<vmem>>, %arg14: memref<2x9xf32, #tpu.memory_space<vmem>>, %arg15: memref<2x4xf32, #tpu.memory_space<vmem>>) attributes {dimension_semantics = [], scalar_prefetch = 0 : i64, scratch_operands = 0 : i64, tpu.core_type = #tpu.core_type<tc>} {
    %c0 = arith.constant 0 : index
    %c0_0 = arith.constant 0 : index
    %c0_1 = arith.constant 0 : index
    %0 = vector.load %arg0[%c0, %c0_0, %c0_1] : memref<2x256x16xf32, #tpu.memory_space<vmem>>, vector<2x256x16xf32>
    %cst = arith.constant dense<0.000000e+00> : vector<2x16xf32>
    %1 = vector.multi_reduction <add>, %0, %cst [1] : vector<2x256x16xf32> to vector<2x16xf32>
    %cst_2 = arith.constant 3.906250e-03 : f32
    %2 = vector.broadcast %cst_2 : f32 to vector<2x16xf32>
    %3 = arith.mulf %1, %2 : vector<2x16xf32>
    %c0_3 = arith.constant 0 : index
    %c0_4 = arith.constant 0 : index
    %4 = vector.load %arg1[%c0_3, %c0_4] : memref<16x16xf32, #tpu.memory_space<vmem>>, vector<16x16xf32>
    %cst_5 = arith.constant dense<0.000000e+00> : vector<2x16xf32>
    %5 = tpu.matmul %3, %4, %cst_5 {dimension_numbers = #tpu.dot_dimension_numbers<[1], [0], [0], [1], [0, 0, 1, 1], [], []>} : vector<2x16xf32>, vector<16x16xf32>, vector<2x16xf32> -> vector<2x16xf32>
    %c0_6 = arith.constant 0 : index
    %c0_7 = arith.constant 0 : index
    %6 = vector.load %arg2[%c0_6, %c0_7] : memref<1x16xf32, #tpu.memory_space<vmem>>, vector<1x16xf32>
    %7 = vector.broadcast %6 : vector<1x16xf32> to vector<2x16xf32>
    %8 = arith.mulf %5, %7 : vector<2x16xf32>
    %c0_8 = arith.constant 0 : index
    %c0_9 = arith.constant 0 : index
    %9 = vector.load %arg3[%c0_8, %c0_9] : memref<1x16xf32, #tpu.memory_space<vmem>>, vector<1x16xf32>
    %10 = vector.broadcast %9 : vector<1x16xf32> to vector<2x16xf32>
    %11 = arith.addf %8, %10 : vector<2x16xf32>
    %cst_10 = arith.constant 0.000000e+00 : f32
    %12 = vector.broadcast %cst_10 : f32 to vector<2x16xf32>
    %13 = arith.maximumf %11, %12 : vector<2x16xf32>
    %c0_11 = arith.constant 0 : index
    %c0_12 = arith.constant 0 : index
    %14 = vector.load %arg4[%c0_11, %c0_12] : memref<16x16xf32, #tpu.memory_space<vmem>>, vector<16x16xf32>
    %cst_13 = arith.constant dense<0.000000e+00> : vector<2x16xf32>
    %15 = tpu.matmul %13, %14, %cst_13 {dimension_numbers = #tpu.dot_dimension_numbers<[1], [0], [0], [1], [0, 0, 1, 1], [], []>} : vector<2x16xf32>, vector<16x16xf32>, vector<2x16xf32> -> vector<2x16xf32>
    %c0_14 = arith.constant 0 : index
    %c0_15 = arith.constant 0 : index
    %16 = vector.load %arg5[%c0_14, %c0_15] : memref<1x16xf32, #tpu.memory_space<vmem>>, vector<1x16xf32>
    %17 = vector.broadcast %16 : vector<1x16xf32> to vector<2x16xf32>
    %18 = arith.addf %15, %17 : vector<2x16xf32>
    %cst_16 = arith.constant 1.000000e+00 : f32
    %19 = vector.broadcast %cst_16 : f32 to vector<2x16xf32>
    %20 = arith.mulf %18, %19 : vector<2x16xf32>
    %cst_17 = arith.constant 0.000000e+00 : f32
    %21 = vector.broadcast %cst_17 : f32 to vector<2x16xf32>
    %22 = arith.subf %21, %20 : vector<2x16xf32>
    %23 = math.exp %22 : vector<2x16xf32>
    %cst_18 = arith.constant 1.000000e+00 : f32
    %24 = vector.broadcast %cst_18 : f32 to vector<2x16xf32>
    %25 = arith.addf %24, %23 : vector<2x16xf32>
    %cst_19 = arith.constant 1.000000e+00 : f32
    %26 = vector.broadcast %cst_19 : f32 to vector<2x16xf32>
    %27 = arith.divf %26, %25 : vector<2x16xf32>
    %c0_20 = arith.constant 0 : index
    %c0_21 = arith.constant 0 : index
    %28 = vector.load %arg6[%c0_20, %c0_21] : memref<16x32xf32, #tpu.memory_space<vmem>>, vector<16x32xf32>
    %cst_22 = arith.constant dense<0.000000e+00> : vector<2x32xf32>
    %29 = tpu.matmul %13, %28, %cst_22 {dimension_numbers = #tpu.dot_dimension_numbers<[1], [0], [0], [1], [0, 0, 1, 1], [], []>} : vector<2x16xf32>, vector<16x32xf32>, vector<2x32xf32> -> vector<2x32xf32>
    %c0_23 = arith.constant 0 : index
    %c0_24 = arith.constant 0 : index
    %30 = vector.load %arg7[%c0_23, %c0_24] : memref<1x32xf32, #tpu.memory_space<vmem>>, vector<1x32xf32>
    %31 = vector.broadcast %30 : vector<1x32xf32> to vector<2x32xf32>
    %32 = arith.addf %29, %31 : vector<2x32xf32>
    %cst_25 = arith.constant 1.000000e+00 : f32
    %33 = vector.broadcast %cst_25 : f32 to vector<2x32xf32>
    %34 = arith.mulf %32, %33 : vector<2x32xf32>
    %cst_26 = arith.constant 0.000000e+00 : f32
    %35 = vector.broadcast %cst_26 : f32 to vector<2x32xf32>
    %36 = arith.subf %35, %34 : vector<2x32xf32>
    %37 = math.exp %36 : vector<2x32xf32>
    %cst_27 = arith.constant 1.000000e+00 : f32
    %38 = vector.broadcast %cst_27 : f32 to vector<2x32xf32>
    %39 = arith.addf %38, %37 : vector<2x32xf32>
    %cst_28 = arith.constant 1.000000e+00 : f32
    %40 = vector.broadcast %cst_28 : f32 to vector<2x32xf32>
    %41 = arith.divf %40, %39 : vector<2x32xf32>
    %c0_29 = arith.constant 0 : index
    %c0_30 = arith.constant 0 : index
    %42 = vector.load %arg8[%c0_29, %c0_30] : memref<16x9xf32, #tpu.memory_space<vmem>>, vector<16x9xf32>
    %cst_31 = arith.constant dense<0.000000e+00> : vector<2x9xf32>
    %43 = tpu.matmul %13, %42, %cst_31 {dimension_numbers = #tpu.dot_dimension_numbers<[1], [0], [0], [1], [0, 0, 1, 1], [], []>} : vector<2x16xf32>, vector<16x9xf32>, vector<2x9xf32> -> vector<2x9xf32>
    %c0_32 = arith.constant 0 : index
    %c0_33 = arith.constant 0 : index
    %44 = vector.load %arg9[%c0_32, %c0_33] : memref<1x9xf32, #tpu.memory_space<vmem>>, vector<1x9xf32>
    %45 = vector.broadcast %44 : vector<1x9xf32> to vector<2x9xf32>
    %46 = arith.addf %43, %45 : vector<2x9xf32>
    %cst_34 = arith.constant 1.000000e+00 : f32
    %47 = vector.broadcast %cst_34 : f32 to vector<2x9xf32>
    %48 = arith.mulf %46, %47 : vector<2x9xf32>
    %cst_35 = arith.constant 0.000000e+00 : f32
    %49 = vector.broadcast %cst_35 : f32 to vector<2x9xf32>
    %50 = arith.subf %49, %48 : vector<2x9xf32>
    %51 = math.exp %50 : vector<2x9xf32>
    %cst_36 = arith.constant 1.000000e+00 : f32
    %52 = vector.broadcast %cst_36 : f32 to vector<2x9xf32>
    %53 = arith.addf %52, %51 : vector<2x9xf32>
    %cst_37 = arith.constant 1.000000e+00 : f32
    %54 = vector.broadcast %cst_37 : f32 to vector<2x9xf32>
    %55 = arith.divf %54, %53 : vector<2x9xf32>
    %c0_38 = arith.constant 0 : index
    %c0_39 = arith.constant 0 : index
    %56 = vector.load %arg10[%c0_38, %c0_39] : memref<16x4xf32, #tpu.memory_space<vmem>>, vector<16x4xf32>
    %cst_40 = arith.constant dense<0.000000e+00> : vector<2x4xf32>
    %57 = tpu.matmul %13, %56, %cst_40 {dimension_numbers = #tpu.dot_dimension_numbers<[1], [0], [0], [1], [0, 0, 1, 1], [], []>} : vector<2x16xf32>, vector<16x4xf32>, vector<2x4xf32> -> vector<2x4xf32>
    %c0_41 = arith.constant 0 : index
    %c0_42 = arith.constant 0 : index
    %58 = vector.load %arg11[%c0_41, %c0_42] : memref<1x4xf32, #tpu.memory_space<vmem>>, vector<1x4xf32>
    %59 = vector.broadcast %58 : vector<1x4xf32> to vector<2x4xf32>
    %60 = arith.addf %57, %59 : vector<2x4xf32>
    %cst_43 = arith.constant 1.000000e+00 : f32
    %61 = vector.broadcast %cst_43 : f32 to vector<2x4xf32>
    %62 = arith.mulf %60, %61 : vector<2x4xf32>
    %cst_44 = arith.constant dense<0xFF800000> : vector<2xf32>
    %63 = vector.multi_reduction <maximumf>, %62, %cst_44 [1] : vector<2x4xf32> to vector<2xf32>
    %64 = vector.shape_cast %63 : vector<2xf32> to vector<2x1xf32>
    %65 = vector.broadcast %64 : vector<2x1xf32> to vector<2x4xf32>
    %66 = arith.subf %62, %65 : vector<2x4xf32>
    %67 = math.exp %66 : vector<2x4xf32>
    %cst_45 = arith.constant dense<0.000000e+00> : vector<2xf32>
    %68 = vector.multi_reduction <add>, %67, %cst_45 [1] : vector<2x4xf32> to vector<2xf32>
    %69 = vector.shape_cast %68 : vector<2xf32> to vector<2x1xf32>
    %70 = vector.broadcast %69 : vector<2x1xf32> to vector<2x4xf32>
    %71 = arith.divf %67, %70 : vector<2x4xf32>
    %c0_46 = arith.constant 0 : index
    %c0_47 = arith.constant 0 : index
    %72 = vector.load %arg13[%c0_46, %c0_47] : memref<2x32xf32, #tpu.memory_space<vmem>>, vector<2x32xf32>
    tpu.vector_store %arg13[%c0_46, %c0_47], %41 {strides = array<i32>} : memref<2x32xf32, #tpu.memory_space<vmem>>, vector<2x32xf32>,
    %c0_48 = arith.constant 0 : index
    %c0_49 = arith.constant 0 : index
    %73 = vector.load %arg14[%c0_48, %c0_49] : memref<2x9xf32, #tpu.memory_space<vmem>>, vector<2x9xf32>
    tpu.vector_store %arg14[%c0_48, %c0_49], %55 {strides = array<i32>} : memref<2x9xf32, #tpu.memory_space<vmem>>, vector<2x9xf32>,
    %c0_50 = arith.constant 0 : index
    %c0_51 = arith.constant 0 : index
    %74 = vector.load %arg15[%c0_50, %c0_51] : memref<2x4xf32, #tpu.memory_space<vmem>>, vector<2x4xf32>
    tpu.vector_store %arg15[%c0_50, %c0_51], %71 {strides = array<i32>} : memref<2x4xf32, #tpu.memory_space<vmem>>, vector<2x4xf32>,
    %75 = vector.extract_strided_slice %0 {offsets = [0, 0, 0], sizes = [1, 256, 16], strides = [1, 1, 1]} : vector<2x256x16xf32> to vector<1x256x16xf32>
    %76 = vector.shape_cast %75 : vector<1x256x16xf32> to vector<256x16xf32>
    %77 = vector.extract_strided_slice %27 {offsets = [0, 0], sizes = [1, 16], strides = [1, 1]} : vector<2x16xf32> to vector<1x16xf32>
    %78 = vector.broadcast %77 : vector<1x16xf32> to vector<256x16xf32>
    %79 = arith.mulf %76, %78 : vector<256x16xf32>
    %c0_52 = arith.constant 0 : index
    %c0_53 = arith.constant 0 : index
    %c0_54 = arith.constant 0 : index
    %80 = vector.load %arg12[%c0_52, %c0_53, %c0_54] : memref<2x256x16xf32, #tpu.memory_space<vmem>>, vector<1x256x16xf32>
    %81 = vector.shape_cast %80 : vector<1x256x16xf32> to vector<256x16xf32>
    %82 = vector.shape_cast %79 : vector<256x16xf32> to vector<1x256x16xf32>
    tpu.vector_store %arg12[%c0_52, %c0_53, %c0_54], %82 {strides = array<i32>} : memref<2x256x16xf32, #tpu.memory_space<vmem>>, vector<1x256x16xf32>,
    %83 = vector.extract_strided_slice %0 {offsets = [1, 0, 0], sizes = [1, 256, 16], strides = [1, 1, 1]} : vector<2x256x16xf32> to vector<1x256x16xf32>
    %84 = vector.shape_cast %83 : vector<1x256x16xf32> to vector<256x16xf32>
    %85 = vector.extract_strided_slice %27 {offsets = [1, 0], sizes = [1, 16], strides = [1, 1]} : vector<2x16xf32> to vector<1x16xf32>
    %86 = vector.broadcast %85 : vector<1x16xf32> to vector<256x16xf32>
    %87 = arith.mulf %84, %86 : vector<256x16xf32>
    %c1 = arith.constant 1 : index
    %c0_55 = arith.constant 0 : index
    %c0_56 = arith.constant 0 : index
    %88 = vector.load %arg12[%c1, %c0_55, %c0_56] : memref<2x256x16xf32, #tpu.memory_space<vmem>>, vector<1x256x16xf32>
    %89 = vector.shape_cast %88 : vector<1x256x16xf32> to vector<256x16xf32>
    %90 = vector.shape_cast %87 : vector<256x16xf32> to vector<1x256x16xf32>
    tpu.vector_store %arg12[%c1, %c0_55, %c0_56], %90 {strides = array<i32>} : memref<2x256x16xf32, #tpu.memory_space<vmem>>, vector<1x256x16xf32>,
    return
  }
}

</mosaic_0001>

<bundles_post_ra>
// kernel: tpu_custom_call.1
= control target key start
LH: loop header
LB: loop body
LE: loop exit
PB: predicated region body
PF: predicated region fallthrough
CT: control target
= control target key end

     0   :  { %21 = vsyncpa [#allocation3], 0  ;;  %vm111_vm0 = vcmask 130048   ;;  %v2054_v3 = vmov 0.0   ;;  %vm1062_vm1 = vmmov 0   ;;  %s2038_s0 = inlined_call_operand.vmem [shape: f32[2,256,16], index: 0, kind: input, shape index: {}]   ;;  %s2039_s1 = inlined_call_operand.vmem [shape: f32[16,16], index: 1, kind: input, shape index: {}]   ;;  %s2040_s2 = inlined_call_operand.vmem [shape: f32[1,16], index: 2, kind: input, shape index: {}]   ;;  %s2041_s3 = inlined_call_operand.vmem [shape: f32[1,16], index: 3, kind: input, shape index: {}]   ;;  %s2042_s4 = inlined_call_operand.vmem [shape: f32[16,16], index: 4, kind: input, shape index: {}]   ;;  %s2043_s5 = inlined_call_operand.vmem [shape: f32[1,16], index: 5, kind: input, shape index: {}]   ;;  %s2044_s6 = inlined_call_operand.vmem [shape: f32[16,32], index: 6, kind: input, shape index: {}]   ;;  %s2045_s7 = inlined_call_operand.vmem [shape: f32[1,32], index: 7, kind: input, shape index: {}]   ;;  %s2046_s8 = inlined_call_operand.vmem [shape: f32[16,9], index: 8, kind: input, shape index: {}]   ;;  %s2047_s9 = inlined_call_operand.vmem [shape: f32[1,9], index: 9, kind: input, shape index: {}]   ;;  %s2048_s10 = inlined_call_operand.vmem [shape: f32[16,4], index: 10, kind: input, shape index: {}]   ;;  %s2049_s11 = inlined_call_operand.vmem [shape: f32[1,4], index: 11, kind: input, shape index: {}]   ;;  %s2050_s12 = inlined_call_operand.vmem [shape: f32[2,256,16], index: 12, kind: output, shape index: {0}]   ;;  %s2051_s13 = inlined_call_operand.hbm [shape: f32[2,32], index: 13, kind: output, shape index: {1}]   ;;  %s2052_s14 = inlined_call_operand.hbm [shape: f32[2,9], index: 14, kind: output, shape index: {2}]   ;;  %s2053_s15 = inlined_call_operand.hbm [shape: f32[2,4], index: 15, kind: output, shape index: {3}]  }
   0x1   :  { %v253_v0 = vld [vmem:[%s2039_s1 + $0x8] sm:$0xff]  ;;  %v252_v1 = vld [vmem:[%s2039_s1] sm:$0xff]  ;;  %941 = vmatprep.subr.mxu0 %v2054_v3  ;;  %945 = vmatprep.mubr.msk.f32.mxu0 %vm1062_vm1, %v2054_v3  ;;  %v1168_v5 = vld [vmem:[%s2038_s0 + $0x10] sm:$0xff] }
   0x2   :  { %v1155_v2 = vld [vmem:[%s2038_s0] sm:$0xff]  ;;  %v1163_v4 = vld [vmem:[%s2038_s0 + $0x8] sm:$0xff]  ;;  %v1173_v6 = vld [vmem:[%s2038_s0 + $0x18] sm:$0xff]  ;;  %942 = vmatpush3.msra.mxu0 %v253_v0  ;;  %v115_v9 = vsel %vm111_vm0, %v1168_v5, 0.0  ;;  %948 = vmatprep.subr.mxu1 %v2054_v3 }
   0x3   :  { %v112_v7 = vsel %vm111_vm0, %v1155_v2, 0.0  ;;  %v113_v8 = vsel %vm111_vm0, %v1163_v4, 0.0  ;;  %943 = vmatprep.subr.mxu0 %v2054_v3  ;;  %v1186_v10 = vld [vmem:[%s2038_s0 + $0x20] sm:$0xff]  ;;  %952 = vmatprep.mubr.msk.f32.mxu1 %vm1062_vm1, %v2054_v3  ;;  %v117_v12 = vsel %vm111_vm0, %v1173_v6, 0.0  ;;  %v1195_v13 = vld [vmem:[%s2038_s0 + $0x28] sm:$0xff]  ;;  %v1203_v16 = vld [vmem:[%s2038_s0 + $0x30] sm:$0xff] }
   0x4   :  { %v114_v11 = vadd.f32 %v113_v8, %v112_v7  ;;  %944 = vmatpush3.msra.mxu0 %v252_v1  ;;  %v119_v15 = vsel %vm111_vm0, %v1186_v10, 0.0  ;;  %v121_v18 = vsel %vm111_vm0, %v1195_v13, 0.0  ;;  %v1210_v19 = vld [vmem:[%s2038_s0 + $0x38] sm:$0xff]  ;;  %v123_v21 = vsel %vm111_vm0, %v1203_v16, 0.0  ;;  %v1217_v22 = vld [vmem:[%s2038_s0 + $0x40] sm:$0xff]  ;;  %v1227_v24 = vld [vmem:[%s2038_s0 + $0x108] sm:$0xff] }
   0x5   :  { %955 = vmatprep.subr.mxu0 %v2054_v3  ;;  %v1222_v23 = vld [vmem:[%s2038_s0 + $0x100] sm:$0xff]  ;;  %v1232_v26 = vld [vmem:[%s2038_s0 + $0x110] sm:$0xff]  ;;  %v1237_v27 = vld [vmem:[%s2038_s0 + $0x118] sm:$0xff]  ;;  %v125_v28 = vsel %vm111_vm0, %v1210_v19, 0.0  ;;  %v182_v30 = vsel %vm111_vm0, %v1227_v24, 0.0  ;;  %v127_v36 = vsel %vm111_vm0, %v1217_v22, 0.0 }
   0x6   :  { %v116_v14 = vadd.f32 %v115_v9, %v114_v11  ;;  %v181_v29 = vsel %vm111_vm0, %v1222_v23, 0.0  ;;  %v1248_v31 = vld [vmem:[%s2038_s0 + $0x48] sm:$0xff]  ;;  %v1253_v32 = vld [vmem:[%s2038_s0 + $0x120] sm:$0xff]  ;;  %v184_v35 = vsel %vm111_vm0, %v1232_v26, 0.0  ;;  %v186_v37 = vsel %vm111_vm0, %v1237_v27, 0.0  ;;  %v1264_v38 = vld [vmem:[%s2038_s0 + $0x50] sm:$0xff] }
   0x7   :  { %v183_v34 = vadd.f32 %v182_v30, %v181_v29  ;;  %v1269_v39 = vld [vmem:[%s2038_s0 + $0x128] sm:$0xff]  ;;  %v129_v42 = vsel %vm111_vm0, %v1248_v31, 0.0  ;;  %v188_v43 = vsel %vm111_vm0, %v1253_v32, 0.0  ;;  %v1278_v44 = vld [vmem:[%s2038_s0 + $0x58] sm:$0xff]  ;;  %v1283_v45 = vld [vmem:[%s2038_s0 + $0x130] sm:$0xff]  ;;  %v131_v48 = vsel %vm111_vm0, %v1264_v38, 0.0 }
   0x8   :  { %v118_v17 = vadd.f32 %v117_v12, %v116_v14  ;;  %v190_v49 = vsel %vm111_vm0, %v1269_v39, 0.0  ;;  %v1292_v50 = vld [vmem:[%s2038_s0 + $0x60] sm:$0xff]  ;;  %v1297_v51 = vld [vmem:[%s2038_s0 + $0x138] sm:$0xff]  ;;  %v133_v54 = vsel %vm111_vm0, %v1278_v44, 0.0  ;;  %v192_v55 = vsel %vm111_vm0, %v1283_v45, 0.0  ;;  %v1306_v56 = vld [vmem:[%s2038_s0 + $0x68] sm:$0xff] }
   0x9   :  { %v185_v41 = vadd.f32 %v184_v35, %v183_v34  ;;  %v1311_v57 = vld [vmem:[%s2038_s0 + $0x140] sm:$0xff]  ;;  %v135_v60 = vsel %vm111_vm0, %v1292_v50, 0.0  ;;  %v194_v61 = vsel %vm111_vm0, %v1297_v51, 0.0 }
   0xa   :  { %v120_v20 = vadd.f32 %v119_v15, %v118_v17 }
   0xb   :  { %v187_v47 = vadd.f32 %v186_v37, %v185_v41 }
   0xc   :  { %v122_v25 = vadd.f32 %v121_v18, %v120_v20 }
   0xd   :  { %v189_v53 = vadd.f32 %v188_v43, %v187_v47 }
   0xe   :  { %v124_v33 = vadd.f32 %v123_v21, %v122_v25 }
   0xf   :  { %v191_v59 = vadd.f32 %v190_v49, %v189_v53 }
  0x10   :  { %v126_v40 = vadd.f32 %v125_v28, %v124_v33 }
  0x12   :  { %v128_v46 = vadd.f32 %v127_v36, %v126_v40 }
  0x14   :  { %v130_v52 = vadd.f32 %v129_v42, %v128_v46 }
  0x16   :  { %v132_v58 = vadd.f32 %v131_v48, %v130_v52 }
  0x17   :  { %22 = vsyncpa [#allocation5], 0  ;;  %v1320_v62 = vld [vmem:[%s2038_s0 + $0x70] sm:$0xff]  ;;  %v1325_v63 = vld [vmem:[%s2038_s0 + $0x148] sm:$0xff]  ;;  %v193_v1 = vadd.f32 %v192_v55, %v191_v59  ;;  %v137_v7 = vsel %vm111_vm0, %v1306_v56, 0.0  ;;  %v196_v8 = vsel %vm111_vm0, %v1311_v57, 0.0 }
  0x18   :  { %2077 = vst [vmem:[#allocation9_spill] sm:$0xff] %v1325_v63  ;;  %v134_v0 = vadd.f32 %v133_v54, %v132_v58  ;;  %v1334_v9 = vld [vmem:[%s2038_s0 + $0x78] sm:$0xff]  ;;  %v1339_v11 = vld [vmem:[%s2038_s0 + $0x150] sm:$0xff]  ;;  %v139_v15 = vsel %vm111_vm0, %v1320_v62, 0.0  ;;  %v198_v17 = vsel %vm111_vm0, %v1325_v63, 0.0  ;;  %v1348_v18 = vld [vmem:[%s2038_s0 + $0x80] sm:$0xff] }
  0x19   :  { %2078 = vst [vmem:[#allocation10_spill] sm:$0xff] %v1339_v11  ;;  %v195_v14 = vadd.f32 %v194_v61, %v193_v1  ;;  %v1353_v20 = vld [vmem:[%s2038_s0 + $0x158] sm:$0xff]  ;;  %v141_v28 = vsel %vm111_vm0, %v1334_v9, 0.0  ;;  %v200_v29 = vsel %vm111_vm0, %v1339_v11, 0.0  ;;  %v1362_v30 = vld [vmem:[%s2038_s0 + $0x88] sm:$0xff]  ;;  %v1367_v33 = vld [vmem:[%s2038_s0 + $0x160] sm:$0xff] }
  0x1a   :  { %v136_v12 = vadd.f32 %v135_v60, %v134_v0  ;;  %2079 = vst [vmem:[#allocation11_spill] sm:$0xff] %v1353_v20  ;;  %2080 = vst [vmem:[#allocation12_spill] sm:$0xff] %v1367_v33  ;;  %v143_v36 = vsel %vm111_vm0, %v1348_v18, 0.0  ;;  %v202_v37 = vsel %vm111_vm0, %v1353_v20, 0.0  ;;  %v1376_v40 = vld [vmem:[%s2038_s0 + $0x90] sm:$0xff]  ;;  %v1381_v41 = vld [vmem:[%s2038_s0 + $0x168] sm:$0xff] }
  0x1b   :  { %v197_v25 = vadd.f32 %v196_v8, %v195_v14  ;;  %2081 = vst [vmem:[#allocation13_spill] sm:$0xff] %v1381_v41  ;;  %v145_v46 = vsel %vm111_vm0, %v1362_v30, 0.0  ;;  %v204_v47 = vsel %vm111_vm0, %v1367_v33, 0.0  ;;  %v1390_v48 = vld [vmem:[%s2038_s0 + $0x98] sm:$0xff]  ;;  %v1395_v49 = vld [vmem:[%s2038_s0 + $0x170] sm:$0xff]  ;;  %v147_v54 = vsel %vm111_vm0, %v1376_v40, 0.0 }
  0x1c   :  { %v138_v21 = vadd.f32 %v137_v7, %v136_v12  ;;  %2082 = vst [vmem:[#allocation14_spill] sm:$0xff] %v1395_v49  ;;  %v206_v55 = vsel %vm111_vm0, %v1381_v41, 0.0  ;;  %v1404_v58 = vld [vmem:[%s2038_s0 + $0xa0] sm:$0xff]  ;;  %v1409_v59 = vld [vmem:[%s2038_s0 + $0x178] sm:$0xff]  ;;  %v149_v0 = vsel %vm111_vm0, %v1390_v48, 0.0  ;;  %v208_v1 = vsel %vm111_vm0, %v1395_v49, 0.0 }
  0x1d   :  { %v199_v35 = vadd.f32 %v198_v17, %v197_v25  ;;  %2083 = vst [vmem:[#allocation15_spill] sm:$0xff] %v1409_v59  ;;  %v1418_v7 = vld [vmem:[%s2038_s0 + $0xa8] sm:$0xff]  ;;  %v1423_v8 = vld [vmem:[%s2038_s0 + $0x180] sm:$0xff]  ;;  %v210_v17 = vsel %vm111_vm0, %v1409_v59, 0.0  ;;  %vm256_vm2 = vcmask 1041409   ;;  %vm684_vm3 = vcmask 25600  }
  0x1e   :  { %v140_v34 = vadd.f32 %v139_v15, %v138_v21  ;;  %2084 = vst [vmem:[#allocation16_spill] sm:$0xff] %v1423_v8  ;;  %v151_v15 = vsel %vm111_vm0, %v1404_v58, 0.0  ;;  %v1432_v21 = vld [vmem:[%s2038_s0 + $0xb0] sm:$0xff]  ;;  %v1437_v25 = vld [vmem:[%s2038_s0 + $0x188] sm:$0xff]  ;;  %vm696_vm4 = vcmask 254976   ;;  %vm698_vm5 = vcmask 66560  }
  0x1f   :  { %v201_v43 = vadd.f32 %v200_v29, %v199_v35  ;;  %2085 = vst [vmem:[#allocation17_spill] sm:$0xff] %v1437_v25  ;;  %v212_v35 = vsel %vm111_vm0, %v1423_v8, 0.0 }
  0x20   :  { %v142_v42 = vadd.f32 %v141_v28, %v140_v34  ;;  %v153_v34 = vsel %vm111_vm0, %v1418_v7, 0.0 }
  0x21   :  { %v203_v53 = vadd.f32 %v202_v37, %v201_v43  ;;  %v1451_v37 = vld [vmem:[%s2038_s0 + $0x190] sm:$0xff] }
  0x22   :  { %v144_v52 = vadd.f32 %v143_v36, %v142_v42  ;;  %v1446_v36 = vld [vmem:[%s2038_s0 + $0xb8] sm:$0xff]  ;;  %2086 = vst [vmem:[#allocation18_spill] sm:$0xff] %v1451_v37 }
  0x23   :  { %v205_v61 = vadd.f32 %v204_v47, %v203_v53  ;;  %v214_v47 = vsel %vm111_vm0, %v1437_v25, 0.0  ;;  %v1465_v53 = vld [vmem:[%s2038_s0 + $0x198] sm:$0xff] }
  0x24   :  { %v146_v60 = vadd.f32 %v145_v46, %v144_v52  ;;  %v155_v46 = vsel %vm111_vm0, %v1432_v21, 0.0  ;;  %v1460_v52 = vld [vmem:[%s2038_s0 + $0xc0] sm:$0xff]  ;;  %2087 = vst [vmem:[#allocation19_spill] sm:$0xff] %v1465_v53 }
  0x25   :  { %v207_v14 = vadd.f32 %v206_v55, %v205_v61  ;;  %v216_v61 = vsel %vm111_vm0, %v1451_v37, 0.0 }
  0x26   :  { %v148_v12 = vadd.f32 %v147_v54, %v146_v60  ;;  %v157_v60 = vsel %vm111_vm0, %v1446_v36, 0.0 }
  0x27   :  { %v209_v29 = vadd.f32 %v208_v1, %v207_v14  ;;  %v1479_v1 = vld [vmem:[%s2038_s0 + $0x1a0] sm:$0xff] }
  0x28   :  { %v150_v28 = vadd.f32 %v149_v0, %v148_v12  ;;  %v1474_v0 = vld [vmem:[%s2038_s0 + $0xc8] sm:$0xff]  ;;  %2088 = vst [vmem:[#allocation20_spill] sm:$0xff] %v1479_v1 }
  0x29   :  { %v211_v43 = vadd.f32 %v210_v17, %v209_v29  ;;  %v218_v17 = vsel %vm111_vm0, %v1465_v53, 0.0  ;;  %v1493_v29 = vld [vmem:[%s2038_s0 + $0x1a8] sm:$0xff] }
  0x2a   :  { %v152_v42 = vadd.f32 %v151_v15, %v150_v28  ;;  %v159_v15 = vsel %vm111_vm0, %v1460_v52, 0.0  ;;  %v1488_v28 = vld [vmem:[%s2038_s0 + $0xd0] sm:$0xff]  ;;  %2089 = vst [vmem:[#allocation21_spill] sm:$0xff] %v1493_v29 }
  0x2b   :  { %v213_v55 = vadd.f32 %v212_v35, %v211_v43  ;;  %v220_v43 = vsel %vm111_vm0, %v1479_v1, 0.0 }
  0x2c   :  { %v154_v54 = vadd.f32 %v153_v34, %v152_v42  ;;  %v161_v42 = vsel %vm111_vm0, %v1474_v0, 0.0 }
  0x2d   :  { %v215_v14 = vadd.f32 %v214_v47, %v213_v55  ;;  %v1507_v47 = vld [vmem:[%s2038_s0 + $0x1b0] sm:$0xff] }
  0x2e   :  { %v156_v12 = vadd.f32 %v155_v46, %v154_v54  ;;  %v1502_v46 = vld [vmem:[%s2038_s0 + $0xd8] sm:$0xff]  ;;  %2090 = vst [vmem:[#allocation22_spill] sm:$0xff] %v1507_v47 }
  0x2f   :  { %v217_v35 = vadd.f32 %v216_v61, %v215_v14  ;;  %v222_v61 = vsel %vm111_vm0, %v1493_v29, 0.0  ;;  %v1521_v14 = vld [vmem:[%s2038_s0 + $0x1b8] sm:$0xff] }
  0x30   :  { %v158_v34 = vadd.f32 %v157_v60, %v156_v12  ;;  %v163_v60 = vsel %vm111_vm0, %v1488_v28, 0.0  ;;  %v1516_v12 = vld [vmem:[%s2038_s0 + $0xe0] sm:$0xff]  ;;  %2091 = vst [vmem:[#allocation23_spill] sm:$0xff] %v1521_v14 }
  0x31   :  { %v219_v55 = vadd.f32 %v218_v17, %v217_v35  ;;  %v224_v17 = vsel %vm111_vm0, %v1507_v47, 0.0  ;;  %v1535_v35 = vld [vmem:[%s2038_s0 + $0x1c0] sm:$0xff] }
  0x32   :  { %v160_v54 = vadd.f32 %v159_v15, %v158_v34  ;;  %v165_v15 = vsel %vm111_vm0, %v1502_v46, 0.0  ;;  %v1530_v34 = vld [vmem:[%s2038_s0 + $0xe8] sm:$0xff]  ;;  %2092 = vst [vmem:[#allocation24_spill] sm:$0xff] %v1535_v35 }
  0x33   :  { %v221_v1 = vadd.f32 %v220_v43, %v219_v55  ;;  %v226_v43 = vsel %vm111_vm0, %v1521_v14, 0.0  ;;  %v1549_v55 = vld [vmem:[%s2038_s0 + $0x1c8] sm:$0xff] }
  0x34   :  { %v162_v3 = vadd.f32 %v161_v42, %v160_v54  ;;  %v167_v42 = vsel %vm111_vm0, %v1516_v12, 0.0  ;;  %v1544_v54 = vld [vmem:[%s2038_s0 + $0xf0] sm:$0xff]  ;;  %2093 = vst [vmem:[#allocation25_spill] sm:$0xff] %v1549_v55 }
  0x35   :  { %v223_v53 = vadd.f32 %v222_v61, %v221_v1  ;;  %v228_v1 = vsel %vm111_vm0, %v1535_v35, 0.0  ;;  %v1563_v61 = vld [vmem:[%s2038_s0 + $0x1d0] sm:$0xff] }
  0x36   :  { %v164_v29 = vadd.f32 %v163_v60, %v162_v3  ;;  %v169_v3 = vsel %vm111_vm0, %v1530_v34, 0.0  ;;  %v1558_v60 = vld [vmem:[%s2038_s0 + $0xf8] sm:$0xff]  ;;  %2094 = vst [vmem:[#allocation26_spill] sm:$0xff] %v1563_v61 }
  0x37   :  { %v225_v37 = vadd.f32 %v224_v17, %v223_v53  ;;  %v171_v53 = vsel %vm111_vm0, %v1544_v54, 0.0  ;;  %v173_v8 = vsel %vm111_vm0, %v1558_v60, 0.0 }
  0x38   :  { %v166_v47 = vadd.f32 %v165_v15, %v164_v29  ;;  %v230_v29 = vsel %vm111_vm0, %v1549_v55, 0.0  ;;  %v1572_v15 = vld [vmem:[%s2038_s0 + $0x1d8] sm:$0xff] }
  0x39   :  { %v227_v25 = vadd.f32 %v226_v43, %v225_v37  ;;  %2095 = vst [vmem:[#allocation27_spill] sm:$0xff] %v1572_v15  ;;  %v1581_v37 = vld [vmem:[%s2038_s0 + $0x1e0] sm:$0xff]  ;;  %v234_v55 = vsel %vm111_vm0, %v1572_v15, 0.0 }
  0x3a   :  { %v168_v14 = vadd.f32 %v167_v42, %v166_v47  ;;  %v232_v47 = vsel %vm111_vm0, %v1563_v61, 0.0  ;;  %2096 = vst [vmem:[#allocation28_spill] sm:$0xff] %v1581_v37  ;;  %v1595_v61 = vld [vmem:[%s2038_s0 + $0x1f0] sm:$0xff] }
  0x3b   :  { %v229_v35 = vadd.f32 %v228_v1, %v227_v25  ;;  %v1588_v25 = vld [vmem:[%s2038_s0 + $0x1e8] sm:$0xff]  ;;  %v236_v1 = vsel %vm111_vm0, %v1581_v37, 0.0 }
  0x3c   :  { %v170_v17 = vadd.f32 %v169_v3, %v168_v14  ;;  %2097 = vst [vmem:[#allocation29_spill] sm:$0xff] %v1588_v25 }
  0x3d   :  { %v231_v43 = vadd.f32 %v230_v29, %v229_v35  ;;  %v238_v29 = vsel %vm111_vm0, %v1588_v25, 0.0 }
  0x3e   :  { %v172_v42 = vadd.f32 %v171_v53, %v170_v17  ;;  %v1602_v17 = vld [vmem:[%s2038_s0 + $0x1f8] sm:$0xff]  ;;  %s1064_s0 = smov [#allocation2]  }
  0x3f   :  { %v233_v3 = vadd.f32 %v232_v47, %v231_v43  ;;  %v242_v15 = vsel %vm111_vm0, %v1602_v17, 0.0  ;;  %s846_s22 = sshll.u32 %s1064_s0, 4  ;;  %s847_s22 = int_to_ptr.vmem [resolvable:$true] %s846_s22 }
  0x40   :  { %v174_v14 = vadd.f32 %v173_v8, %v172_v42  ;;  %v240_v42 = vsel %vm111_vm0, %v1595_v61, 0.0 }
  0x41   :  { %v235_v35 = vadd.f32 %v234_v55, %v233_v3 }
  0x42   :  { %v175_v53 = vrot.slane %v174_v14, 4 }
  0x43   :  { %v237_v47 = vadd.f32 %v236_v1, %v235_v35 }
  0x44   :  { %v176_v8 = vadd.f32 %v175_v53, %v174_v14 }
  0x45   :  { %v239_v37 = vadd.f32 %v238_v29, %v237_v47  ;;  %v2098_v29 = vmov 0.0   ;;  %v606_v47 = vld [vmem:[%s2048_s10 + $0x8] sm:$0xff] }
  0x46   :  { %v177_v43 = vrot.slane %v176_v8, 2 }
  0x47   :  { %v241_v59 = vadd.f32 %v240_v42, %v239_v37  ;;  %v521_v42 = vld [vmem:[%s2046_s8 + $0x8] sm:$0xff] }
  0x48   :  { %v178_v55 = vadd.f32 %v177_v43, %v176_v8  ;;  %v605_v43 = vld [vmem:[%s2048_s10] sm:$0xff] }
  0x49   :  { %v243_v3 = vadd.f32 %v242_v15, %v241_v59  ;;  %v436_v59 = vld [vmem:[%s2044_s6 + $0x8] sm:$0xff] }
  0x4a   :  { %v179_v25 = vrot.slane %v178_v55, 1 }
  0x4b   :  { %v244_v49 = vrot.slane %v243_v3, 4 }
  0x4c   :  { %v180_v20 = vadd.f32 %v179_v25, %v178_v55  ;;  %v520_v55 = vld [vmem:[%s2046_s8] sm:$0xff]  ;;  %s1063_s8 = smov [#allocation4]  }
  0x4d   :  { %v245_v41 = vadd.f32 %v244_v49, %v243_v3  ;;  %v348_v49 = vld [vmem:[%s2042_s4 + $0x8] sm:$0xff]  ;;  %v886_v3 = vld [vmem:[%s2043_s5] ss:$0 sm:$0xff]  ;;  %s856_s21 = sshll.u32 %s1063_s8, 4  ;;  %s857_s21 = int_to_ptr.vmem [resolvable:$true] %s856_s21 }
  0x4e   :  { %v250_v1 = vmul.f32 0.00390625, %v180_v20  ;;  %949 = vmatpush3.msra.mxu1 %v348_v49  ;;  %v884_v20 = vld [vmem:[%s2040_s2] ss:$0 sm:$0xff]  ;;  %s997_s23 = scalar_lea.vmem %s857_s21, 32  ;;  %p1002_p1 = scmp.lt.s32.totalorder %s857_s21, %s857_s21 }
  0x4f   :  { %v246_v33 = vrot.slane %v245_v41, 2  ;;  %950 = vmatprep.subr.mxu1 %v2098_v29  ;;  %p998_p0 = scmp.ne.s32.totalorder %s857_s21, %s997_s23  ;;  %p1003_p2 = scmp.lt.s32.totalorder %s997_s23, %s997_s23 }
  0x51   :  { %v247_v11 = vadd.f32 %v246_v33, %v245_v41  ;;  %v885_v41 = vld [vmem:[%s2041_s3] ss:$0 sm:$0xff]  ;;  %p1004_p3 = por %p1003_p2, %p1002_p1 }
  0x53   :  { %v248_v63 = vrot.slane %v247_v11, 1  ;;  %p1005_p4 = pnand %p1004_p3, %p998_p0 }
  0x55   :  { %v249_v14 = vadd.f32 %v248_v63, %v247_v11  ;;  %v435_v63 = vld [vmem:[%s2044_s6] sm:$0xff] }
  0x56   :  { %v347_v11 = vld [vmem:[%s2042_s4] sm:$0xff] }
  0x57   :  { %v251_v53 = vmul.f32 0.00390625, %v249_v14  ;;  %951 = vmatpush3.msra.mxu1 %v347_v11  ;;  %v888_v14 = vld [vmem:[%s2045_s7] ss:$0 sm:$0xff] }
  0x58   :  { %962 = vmatprep.subr.mxu1 %v2098_v29 }
  0x59   :  { %v257_v35 = vsel %vm256_vm2, %v251_v53, %v250_v1 }
  0x5a   :  { %946 = vmatmul.mubr.msk.f32.vlgmr.msra.gmra.mxu0 %vm111_vm0, %v257_v35 }
  0x5b   :  { %959 = vmatprep.mubr.msk.f32.mxu0 %vm1062_vm1, %v2098_v29  ;;  %956 = vmatpush3.msra.mxu0 %v436_v59 }
  0x5c   :  { %957 = vmatprep.subr.mxu0 %v2098_v29 }
  0x5d   :  { %958 = vmatpush3.msra.mxu0 %v435_v63 }
  0x5e   :  { %969 = vmatprep.subr.mxu0 %v2098_v29 }
 0x11a   :  { %v326_v33 = vpop.f32.mrf.mxu0 }
 0x11b   :  { %v337_v15 = vmul.f32 %v884_v20, %v326_v33  ;;  %v890_v20 = vld [vmem:[%s2047_s9] ss:$0 sm:$0xff] }
 0x11c   :  { %v947_v37 = vpop.f32.mrf.mxu0  ;;  %v892_v33 = vld [vmem:[%s2049_s11] ss:$0 sm:$0xff] }
 0x11d   :  { %v345_v25 = vadd.f32 %v885_v41, %v337_v15 }
 0x11f   :  { %v346_v8 = vmax.f32 %v345_v25, 0.0 }
 0x121   :  { %953 = vmatmul.mubr.msk.f32.vlgmr.msra.gmra.mxu1 %vm111_vm0, %v346_v8  ;;  %960 = vmatmul.mubr.msk.f32.vlgmr.msra.gmra.mxu0 %vm111_vm0, %v346_v8 }
 0x122   :  { %970 = vmatpush3.msra.mxu0 %v606_v47  ;;  %963 = vmatpush3.msra.mxu1 %v521_v42 }
 0x123   :  { %971 = vmatprep.subr.mxu0 %v2098_v29  ;;  %964 = vmatprep.subr.mxu1 %v2098_v29 }
 0x124   :  { %972 = vmatpush3.msra.mxu0 %v605_v43  ;;  %965 = vmatpush3.msra.mxu1 %v520_v55 }
 0x125   :  { %966 = vmatprep.mubr.msk.f32.mxu1 %vm1062_vm1, %v2098_v29  ;;  %973 = vmatprep.mubr.msk.f32.mxu0 %vm1062_vm1, %v2098_v29 }
 0x126   :  { %967 = vmatmul.mubr.msk.f32.vlgmr.msra.gmra.mxu1 %vm111_vm0, %v346_v8  ;;  %974 = vmatmul.mubr.msk.f32.vlgmr.msra.gmra.mxu0 %vm111_vm0, %v346_v8 }
 0x1e1   :  { %v425_v1 = vpop.f32.mrf.mxu1  ;;  %v510_v53 = vpop.f32.mrf.mxu0 }
 0x1e2   :  { %v426_v35 = vadd.f32 %v886_v3, %v425_v1  ;;  %v511_v59 = vadd.f32 %v888_v14, %v510_v53 }
 0x1e3   :  { %v954_v49 = vpop.f32.mrf.mxu1  ;;  %v961_v63 = vpop.f32.mrf.mxu0 }
 0x1e4   :  { %v429_v11 = vsub.f32 0.0, %v426_v35  ;;  %v514_v29 = vsub.f32 0.0, %v511_v59  ;;  %v701_v63 = vlaneseq }
 0x1e6   :  { %v430_v41 = vmul.f32 1.442695, %v429_v11  ;;  %v515_v15 = vmul.f32 1.442695, %v514_v29  ;;  %v595_v37 = vpop.f32.mrf.mxu1  ;;  %v680_v25 = vpop.f32.mrf.mxu0  ;;  %v702_v29 = vshrl.u32 %v701_v63, 7  ;;  %v2104_v63 = vld [vmem:[#allocation14_spill] sm:$0xff] }
 0x1e7   :  { %v596_v8 = vadd.f32 %v890_v20, %v595_v37  ;;  %v1667_v47 = vadd.f32 %v892_v33, %v680_v25 }
 0x1e8   :  { %981 = vpow2.f32 %v430_v41  ;;  %v968_v42 = vpop.f32.mrf.mxu1  ;;  %v975_v43 = vpop.f32.mrf.mxu0  ;;  %v703_v20 = vsub.s32 0, %v702_v29  ;;  %v771_v33 = vsub.s32 1, %v702_v29  ;;  %v2105_v29 = vld [vmem:[#allocation15_spill] sm:$0xff] }
 0x1e9   :  { %983 = vpow2.f32 %v515_v15  ;;  %v599_v55 = vsub.f32 0.0, %v596_v8  ;;  %v685_v3 = vsel %vm684_vm3, %v1667_v47, -inf }
 0x1ea   :  { %686 = vmax.xlane.f32.xlu0 %v685_v3 }
 0x1eb   :  { %v600_v14 = vmul.f32 1.442695, %v599_v55 }
 0x1ed   :  { %985 = vpow2.f32 %v600_v14 }
 0x1f5   :  { %v982_v1 = vpop.eup %981 }
 0x1f6   :  { %v984_v53 = vpop.eup %983  ;;  %v432_v35 = vadd.f32 1.0, %v982_v1 }
 0x1f7   :  { %v517_v59 = vadd.f32 1.0, %v984_v53 }
 0x1f8   :  { %987 = vrcp.f32 %v432_v35 }
 0x1f9   :  { %989 = vrcp.f32 %v517_v59 }
 0x1fa   :  { %v986_v49 = vpop.eup %985 }
 0x1fb   :  { %v602_v11 = vadd.f32 1.0, %v986_v49 }
 0x1fd   :  { %991 = vrcp.f32 %v602_v11 }
 0x205   :  { %v988_v41 = vpop.eup %987 }
 0x206   :  { %v990_v15 = vpop.eup %989  ;;  %v704_v37 = vrot.slane %v988_v41, %v703_v20  ;;  %v1671_v25 = vrot.slane %v988_v41, %v771_v33  ;;  %v2106_v33 = vld [vmem:[#allocation16_spill] sm:$0xff] }
 0x207   :  { %697 = vst.msk [vmem:[#allocation2] sm:$0x3] %vm696_vm4, %v990_v15  ;;  %v2107_v15 = vld [vmem:[#allocation17_spill] sm:$0xff] }
 0x208   :  { %v705_v8 = vmul.f32 %v704_v37, %v1155_v2  ;;  %v706_v42 = vmul.f32 %v704_v37, %v1163_v4  ;;  %v707_v43 = vmul.f32 %v704_v37, %v1168_v5  ;;  %v708_v55 = vmul.f32 %v704_v37, %v1173_v6 }
 0x209   :  { %v709_v3 = vmul.f32 %v704_v37, %v1186_v10  ;;  %v710_v14 = vmul.f32 %v704_v37, %v1195_v13  ;;  %v711_v1 = vmul.f32 %v704_v37, %v1203_v16  ;;  %v712_v53 = vmul.f32 %v704_v37, %v1210_v19 }
 0x20a   :  { %v992_v35 = vpop.eup %991  ;;  %v713_v59 = vmul.f32 %v704_v37, %v1217_v22  ;;  %v714_v49 = vmul.f32 %v704_v37, %v1248_v31  ;;  %v715_v2 = vmul.f32 %v704_v37, %v1264_v38  ;;  %v716_v4 = vmul.f32 %v704_v37, %v1278_v44  ;;  %737 = vst.msk [vmem:[%s2050_s12] sm:$0xff] %vm111_vm0, %v705_v8  ;;  %v2108_v8 = vld [vmem:[#allocation18_spill] sm:$0xff] }
 0x20b   :  { %738 = vst.msk [vmem:[%s2050_s12 + $0x8] sm:$0xff] %vm111_vm0, %v706_v42  ;;  %739 = vst.msk [vmem:[%s2050_s12 + $0x10] sm:$0xff] %vm111_vm0, %v707_v43  ;;  %v717_v5 = vmul.f32 %v704_v37, %v1292_v50  ;;  %v718_v6 = vmul.f32 %v704_v37, %v1306_v56  ;;  %v719_v10 = vmul.f32 %v704_v37, %v1320_v62  ;;  %v2109_v43 = vld [vmem:[#allocation19_spill] sm:$0xff] }
 0x20c   :  { %740 = vst.msk [vmem:[%s2050_s12 + $0x18] sm:$0xff] %vm111_vm0, %v708_v55  ;;  %v720_v13 = vmul.f32 %v704_v37, %v1334_v9  ;;  %741 = vst.msk [vmem:[%s2050_s12 + $0x20] sm:$0xff] %vm111_vm0, %v709_v3  ;;  %v721_v16 = vmul.f32 %v704_v37, %v1348_v18  ;;  %v722_v19 = vmul.f32 %v704_v37, %v1362_v30  ;;  %v2110_v3 = vld [vmem:[#allocation20_spill] sm:$0xff] }
 0x20d   :  { %742 = vst.msk [vmem:[%s2050_s12 + $0x28] sm:$0xff] %vm111_vm0, %v710_v14  ;;  %743 = vst.msk [vmem:[%s2050_s12 + $0x30] sm:$0xff] %vm111_vm0, %v711_v1  ;;  %v723_v22 = vmul.f32 %v704_v37, %v1376_v40  ;;  %v724_v31 = vmul.f32 %v704_v37, %v1390_v48  ;;  %v725_v38 = vmul.f32 %v704_v37, %v1404_v58  ;;  %v2111_v1 = vld [vmem:[#allocation21_spill] sm:$0xff] }
 0x20e   :  { %744 = vst.msk [vmem:[%s2050_s12 + $0x38] sm:$0xff] %vm111_vm0, %v712_v53  ;;  %745 = vst.msk [vmem:[%s2050_s12 + $0x40] sm:$0xff] %vm111_vm0, %v713_v59  ;;  %v726_v44 = vmul.f32 %v704_v37, %v1418_v7  ;;  %v727_v50 = vmul.f32 %v704_v37, %v1432_v21  ;;  %v728_v56 = vmul.f32 %v704_v37, %v1446_v36 }
 0x20f   :  { %699 = vst.msk [vmem:[#allocation4] sm:$0x3] %vm698_vm5, %v992_v35  ;;  %v729_v62 = vmul.f32 %v704_v37, %v1460_v52  ;;  %v730_v9 = vmul.f32 %v704_v37, %v1474_v0  ;;  %v731_v18 = vmul.f32 %v704_v37, %v1488_v28  ;;  %v732_v30 = vmul.f32 %v704_v37, %v1502_v46  ;;  %v2099_v46 = vld [vmem:[#allocation9_spill] sm:$0xff]  ;;  %v2112_v35 = vld [vmem:[#allocation22_spill] sm:$0xff] }
 0x210   :  { %746 = vst.msk [vmem:[%s2050_s12 + $0x48] sm:$0xff] %vm111_vm0, %v714_v49  ;;  %747 = vst.msk [vmem:[%s2050_s12 + $0x50] sm:$0xff] %vm111_vm0, %v715_v2  ;;  %v733_v40 = vmul.f32 %v704_v37, %v1516_v12  ;;  %v734_v48 = vmul.f32 %v704_v37, %v1530_v34  ;;  %v735_v58 = vmul.f32 %v704_v37, %v1544_v54  ;;  %v2100_v34 = vld [vmem:[#allocation10_spill] sm:$0xff]  ;;  %v2113_v49 = vld [vmem:[#allocation23_spill] sm:$0xff] }
 0x211   :  { %748 = vst.msk [vmem:[%s2050_s12 + $0x58] sm:$0xff] %vm111_vm0, %v716_v4  ;;  %749 = vst.msk [vmem:[%s2050_s12 + $0x60] sm:$0xff] %vm111_vm0, %v717_v5  ;;  %v736_v7 = vmul.f32 %v704_v37, %v1558_v60  ;;  %v773_v21 = vmul.f32 %v1671_v25, %v1222_v23  ;;  %v774_v36 = vmul.f32 %v1671_v25, %v1227_v24  ;;  %v2101_v60 = vld [vmem:[#allocation11_spill] sm:$0xff]  ;;  %v2114_v4 = vld [vmem:[#allocation24_spill] sm:$0xff] }
 0x212   :  { %750 = vst.msk [vmem:[%s2050_s12 + $0x68] sm:$0xff] %vm111_vm0, %v718_v6  ;;  %751 = vst.msk [vmem:[%s2050_s12 + $0x70] sm:$0xff] %vm111_vm0, %v719_v10  ;;  %v775_v52 = vmul.f32 %v1671_v25, %v1232_v26  ;;  %v776_v0 = vmul.f32 %v1671_v25, %v1237_v27  ;;  %v777_v23 = vmul.f32 %v1671_v25, %v1253_v32  ;;  %v2115_v6 = vld [vmem:[#allocation25_spill] sm:$0xff] }
 0x213   :  { %752 = vst.msk [vmem:[%s2050_s12 + $0x78] sm:$0xff] %vm111_vm0, %v720_v13  ;;  %753 = vst.msk [vmem:[%s2050_s12 + $0x80] sm:$0xff] %vm111_vm0, %v721_v16  ;;  %v778_v24 = vmul.f32 %v1671_v25, %v1269_v39  ;;  %v779_v26 = vmul.f32 %v1671_v25, %v1283_v45  ;;  %v780_v27 = vmul.f32 %v1671_v25, %v1297_v51  ;;  %v2102_v39 = vld [vmem:[#allocation12_spill] sm:$0xff]  ;;  %v2103_v51 = vld [vmem:[#allocation13_spill] sm:$0xff] }
 0x214   :  { %754 = vst.msk [vmem:[%s2050_s12 + $0x88] sm:$0xff] %vm111_vm0, %v722_v19  ;;  %755 = vst.msk [vmem:[%s2050_s12 + $0x90] sm:$0xff] %vm111_vm0, %v723_v22  ;;  %v781_v28 = vmul.f32 %v1671_v25, %v1311_v57  ;;  %v782_v12 = vmul.f32 %v1671_v25, %v2099_v46  ;;  %v783_v54 = vmul.f32 %v1671_v25, %v2100_v34  ;;  %v2116_v13 = vld [vmem:[#allocation26_spill] sm:$0xff]  ;;  %v2117_v19 = vld [vmem:[#allocation27_spill] sm:$0xff] }
 0x215   :  { %756 = vst.msk [vmem:[%s2050_s12 + $0x98] sm:$0xff] %vm111_vm0, %v724_v31  ;;  %757 = vst.msk [vmem:[%s2050_s12 + $0xa0] sm:$0xff] %vm111_vm0, %v725_v38  ;;  %v784_v32 = vmul.f32 %v1671_v25, %v2101_v60  ;;  %v785_v45 = vmul.f32 %v1671_v25, %v2102_v39  ;;  %v786_v57 = vmul.f32 %v1671_v25, %v2103_v51  ;;  %v2118_v31 = vld [vmem:[#allocation28_spill] sm:$0xff] }
 0x216   :  { %758 = vst.msk [vmem:[%s2050_s12 + $0xa8] sm:$0xff] %vm111_vm0, %v726_v44  ;;  %759 = vst.msk [vmem:[%s2050_s12 + $0xb0] sm:$0xff] %vm111_vm0, %v727_v50  ;;  %v787_v11 = vmul.f32 %v1671_v25, %v2104_v63  ;;  %v788_v20 = vmul.f32 %v1671_v25, %v2105_v29  ;;  %v789_v41 = vmul.f32 %v1671_v25, %v2106_v33  ;;  %v2119_v44 = vld [vmem:[#allocation29_spill] sm:$0xff] }
 0x217   :  { %760 = vst.msk [vmem:[%s2050_s12 + $0xb8] sm:$0xff] %vm111_vm0, %v728_v56  ;;  %761 = vst.msk [vmem:[%s2050_s12 + $0xc0] sm:$0xff] %vm111_vm0, %v729_v62  ;;  %v790_v37 = vmul.f32 %v1671_v25, %v2107_v15  ;;  %v791_v42 = vmul.f32 %v1671_v25, %v2108_v8  ;;  %v792_v55 = vmul.f32 %v1671_v25, %v2109_v43 }
 0x218   :  { %762 = vst.msk [vmem:[%s2050_s12 + $0xc8] sm:$0xff] %vm111_vm0, %v730_v9  ;;  %763 = vst.msk [vmem:[%s2050_s12 + $0xd0] sm:$0xff] %vm111_vm0, %v731_v18  ;;  %v793_v14 = vmul.f32 %v1671_v25, %v2110_v3  ;;  %v794_v53 = vmul.f32 %v1671_v25, %v2111_v1  ;;  %v795_v59 = vmul.f32 %v1671_v25, %v2112_v35 }
 0x219   :  { %764 = vst.msk [vmem:[%s2050_s12 + $0xd8] sm:$0xff] %vm111_vm0, %v732_v30  ;;  %765 = vst.msk [vmem:[%s2050_s12 + $0xe0] sm:$0xff] %vm111_vm0, %v733_v40  ;;  %v796_v2 = vmul.f32 %v1671_v25, %v2113_v49  ;;  %v797_v5 = vmul.f32 %v1671_v25, %v2114_v4  ;;  %v798_v10 = vmul.f32 %v1671_v25, %v2115_v6 }
 0x21a   :  { %766 = vst.msk [vmem:[%s2050_s12 + $0xe8] sm:$0xff] %vm111_vm0, %v734_v48  ;;  %767 = vst.msk [vmem:[%s2050_s12 + $0xf0] sm:$0xff] %vm111_vm0, %v735_v58  ;;  %v799_v16 = vmul.f32 %v1671_v25, %v2116_v13  ;;  %v800_v22 = vmul.f32 %v1671_v25, %v2117_v19  ;;  %v801_v38 = vmul.f32 %v1671_v25, %v2118_v31 }
 0x21b   :  { %768 = vst.msk [vmem:[%s2050_s12 + $0xf8] sm:$0xff] %vm111_vm0, %v736_v7  ;;  %894 = vst.msk [vmem:[%s2050_s12 + $0x100] sm:$0xff] %vm111_vm0, %v773_v21  ;;  %v802_v50 = vmul.f32 %v1671_v25, %v2119_v44  ;;  %v803_v56 = vmul.f32 %v1671_v25, %v1595_v61  ;;  %v804_v62 = vmul.f32 %v1671_v25, %v1602_v17 }
 0x21c   :  { %895 = vst.msk [vmem:[%s2050_s12 + $0x108] sm:$0xff] %vm111_vm0, %v774_v36  ;;  %896 = vst.msk [vmem:[%s2050_s12 + $0x110] sm:$0xff] %vm111_vm0, %v775_v52 }
 0x21d   :  { %897 = vst.msk [vmem:[%s2050_s12 + $0x118] sm:$0xff] %vm111_vm0, %v776_v0  ;;  %898 = vst.msk [vmem:[%s2050_s12 + $0x120] sm:$0xff] %vm111_vm0, %v777_v23 }
 0x21e   :  { %899 = vst.msk [vmem:[%s2050_s12 + $0x128] sm:$0xff] %vm111_vm0, %v778_v24  ;;  %900 = vst.msk [vmem:[%s2050_s12 + $0x130] sm:$0xff] %vm111_vm0, %v779_v26 }
 0x21f   :  { %901 = vst.msk [vmem:[%s2050_s12 + $0x138] sm:$0xff] %vm111_vm0, %v780_v27  ;;  %902 = vst.msk [vmem:[%s2050_s12 + $0x140] sm:$0xff] %vm111_vm0, %v781_v28 }
 0x220   :  { %903 = vst.msk [vmem:[%s2050_s12 + $0x148] sm:$0xff] %vm111_vm0, %v782_v12  ;;  %904 = vst.msk [vmem:[%s2050_s12 + $0x150] sm:$0xff] %vm111_vm0, %v783_v54 }
 0x221   :  { %905 = vst.msk [vmem:[%s2050_s12 + $0x158] sm:$0xff] %vm111_vm0, %v784_v32  ;;  %906 = vst.msk [vmem:[%s2050_s12 + $0x160] sm:$0xff] %vm111_vm0, %v785_v45 }
 0x222   :  { %907 = vst.msk [vmem:[%s2050_s12 + $0x168] sm:$0xff] %vm111_vm0, %v786_v57  ;;  %908 = vst.msk [vmem:[%s2050_s12 + $0x170] sm:$0xff] %vm111_vm0, %v787_v11 }
 0x223   :  { %909 = vst.msk [vmem:[%s2050_s12 + $0x178] sm:$0xff] %vm111_vm0, %v788_v20  ;;  %910 = vst.msk [vmem:[%s2050_s12 + $0x180] sm:$0xff] %vm111_vm0, %v789_v41 }
 0x224   :  { %911 = vst.msk [vmem:[%s2050_s12 + $0x188] sm:$0xff] %vm111_vm0, %v790_v37  ;;  %912 = vst.msk [vmem:[%s2050_s12 + $0x190] sm:$0xff] %vm111_vm0, %v791_v42 }
 0x225   :  { %913 = vst.msk [vmem:[%s2050_s12 + $0x198] sm:$0xff] %vm111_vm0, %v792_v55  ;;  %914 = vst.msk [vmem:[%s2050_s12 + $0x1a0] sm:$0xff] %vm111_vm0, %v793_v14 }
 0x226   :  { %915 = vst.msk [vmem:[%s2050_s12 + $0x1a8] sm:$0xff] %vm111_vm0, %v794_v53  ;;  %916 = vst.msk [vmem:[%s2050_s12 + $0x1b0] sm:$0xff] %vm111_vm0, %v795_v59 }
 0x227   :  { %917 = vst.msk [vmem:[%s2050_s12 + $0x1b8] sm:$0xff] %vm111_vm0, %v796_v2  ;;  %918 = vst.msk [vmem:[%s2050_s12 + $0x1c0] sm:$0xff] %vm111_vm0, %v797_v5 }
 0x228   :  { %919 = vst.msk [vmem:[%s2050_s12 + $0x1c8] sm:$0xff] %vm111_vm0, %v798_v10  ;;  %920 = vst.msk [vmem:[%s2050_s12 + $0x1d0] sm:$0xff] %vm111_vm0, %v799_v16 }
 0x229   :  { %921 = vst.msk [vmem:[%s2050_s12 + $0x1d8] sm:$0xff] %vm111_vm0, %v800_v22  ;;  %922 = vst.msk [vmem:[%s2050_s12 + $0x1e0] sm:$0xff] %vm111_vm0, %v801_v38 }
 0x22a   :  { %923 = vst.msk [vmem:[%s2050_s12 + $0x1e8] sm:$0xff] %vm111_vm0, %v802_v50  ;;  %924 = vst.msk [vmem:[%s2050_s12 + $0x1f0] sm:$0xff] %vm111_vm0, %v803_v56 }
 0x22b   :  { %925 = vst.msk [vmem:[%s2050_s12 + $0x1f8] sm:$0xff] %vm111_vm0, %v804_v62 }
 0x273   :  { %v687_v61 = vpop.xlane.xlu0 %686 }
 0x274   :  { %v688_v17 = vsub.f32 %v1667_v47, %v687_v61 }
 0x276   :  { %v689_v25 = vmul.f32 1.442695, %v688_v17 }
 0x278   :  { %993 = vpow2.f32 %v689_v25 }
 0x285   :  { %v994_v9 = vpop.eup %993 }
 0x286   :  { %v691_v18 = vsel %vm684_vm3, %v994_v9, 0.0 }
 0x287   :  { %692 = vadd.xlane.f32.xlu0 %v691_v18 }
 0x288   :  { %1008 = shalt.err (!%p1005_p4)
}
 0x289   :  { %859 = dma.vmem_to_hbm [thread:$0]  %s857_s21, 32, %s2052_s14, [#allocation5]  }
 0x28a   :  { %s1017_s25 = scalar_lea.vmem %s847_s22, 32  ;;  %p1022_p6 = scmp.lt.s32.totalorder %s847_s22, %s847_s22 }
 0x28b   :  { %p1018_p5 = scmp.ne.s32.totalorder %s847_s22, %s1017_s25  ;;  %p1023_p7 = scmp.lt.s32.totalorder %s1017_s25, %s1017_s25 }
 0x28d   :  { %p1024_p8 = por %p1023_p7, %p1022_p6 }
 0x28f   :  { %p1025_p9 = pnand %p1024_p8, %p1018_p5 }
 0x291   :  { %1028 = shalt.err (!%p1025_p9)
}
 0x292   :  { %849 = dma.vmem_to_hbm [thread:$0]  %s847_s22, 32, %s2051_s13, [#allocation3]  }
 0x293   :  { %s1065_s9 = smov [#allocation6]  }
 0x294   :  { %s866_s11 = sshll.u32 %s1065_s9, 4  ;;  %s867_s11 = int_to_ptr.vmem [resolvable:$true] %s866_s11 }
 0x295   :  { %s1037_s14 = scalar_lea.vmem %s867_s11, 32  ;;  %p1042_p11 = scmp.lt.s32.totalorder %s867_s11, %s867_s11 }
 0x296   :  { %p1038_p10 = scmp.ne.s32.totalorder %s867_s11, %s1037_s14  ;;  %p1043_p12 = scmp.lt.s32.totalorder %s1037_s14, %s1037_s14 }
 0x298   :  { %p1044_p13 = por %p1043_p12, %p1042_p11 }
 0x29a   :  { %p1045_p0 = pnand %p1044_p13, %p1038_p10 }
 0x310   :  { %v693_v47 = vpop.xlane.xlu0 %692 }
 0x311   :  { %995 = vrcp.f32 %v693_v47 }
 0x31e   :  { %v996_v30 = vpop.eup %995 }
 0x31f   :  { %v695_v40 = vmul.f32 %v996_v30, %v994_v9 }
 0x321   :  { %700 = vst.msk [vmem:[#allocation6] sm:$0x3] %vm684_vm3, %v695_v40 }
 0x322   :  { %1048 = shalt.err (!%p1045_p0)
}
 0x323   :  { %869 = dma.vmem_to_hbm [thread:$0]  %s867_s11, 32, %s2053_s15, [#allocation5]  }
 0x324   :  { %1057 = dma.done.wait [#allocation3], 32  }
 0x325   :  { %1058 = vsyncadd [#allocation3], 4294967264 }
 0x326   :  { %1059 = dma.done.wait [#allocation5], 64  }
 0x327   :  { %1060 = vsyncadd [#allocation5], 4294967232 }
 0x328   :  { %881 = vsyncpa [#allocation3], 1 }
 0x329   :  { %882 = vsyncpa [#allocation5], 1 }

</bundles_post_ra>
